<compile_context>
chip_gen: v7x
topology: tpu7x:2x2x1
jax: 0.10.0
libtpu: 0.0.40
codegen_flags: <defaults>
</compile_context>

<pallas_src>
import functools

import jax
import jax.numpy as jnp
from jax.experimental import pallas as pl
from jax.experimental.pallas import tpu as pltpu


# ---------------------------------------------------------------------------
# helpers: padding / VMEM-aware tile planning
# ---------------------------------------------------------------------------
def _round_up(n, m):
    return ((n + m - 1) // m) * m


def _pad_to(x, shape):
    return jnp.pad(x, [(0, t - s) for s, t in zip(x.shape, shape)])


def _vmem_capacity_bytes():
    """Physical VMEM per TensorCore; conservative v7x (64 MiB) fallback."""
    try:
        info_fn = getattr(pltpu, "get_tpu_info", None)
        if info_fn is not None:
            cap = int(info_fn().vmem_capacity_bytes)
            if cap > 0:
                return cap
    except Exception:
        pass
    return 64 << 20


def _conv_vmem_bytes(tm, tk, fi, fh, fo):
    """Rough VMEM need of one conv pallas_call (double-buffered streams)."""
    a_stream = 2 * tm * tk * 2                                  # Â tiles, bf16
    x_stream = 2 * tk * max(fi, fo) * 2                         # X / Z tiles
    weights = 2 * ((fi * fh + fh * fo) * 2 + (fh + fo) * 4)     # resident W/b
    out_stream = 2 * tm * fo * 2                                # output tiles
    acc = tm * max(fi, fo) * 4                                  # f32 scratch
    return a_stream + x_stream + weights + out_stream + acc


def _choose_conv_tiling(num_nodes, fi, fh, fo):
    """Pick (tm, tk, np_pad, vmem_need) for the Â contraction.

    VMEM-aware (v5e/v6e ~128 MiB, v7x ~64 MiB per TensorCore).  The node axis
    is padded to the chosen tile (tile never degrades to 128 for big graphs),
    and >=2 row tiles are preferred so the "parallel" row axis can be split
    across v7x's two TensorCores.
    """
    np128 = _round_up(num_nodes, 128)
    budget = min(_vmem_capacity_bytes() // 2, 48 << 20)
    best_key, best = None, None
    for tm in (1024, 512, 256, 128):
        for tk in (1024, 512, 256, 128):
            if tm > np128 or tk > np128:
                continue
            np_pad = _round_up(num_nodes, max(tm, tk))
            need = _conv_vmem_bytes(tm, tk, fi, fh, fo)
            if need > budget:
                continue
            rows = np_pad // tm
            # prefer >=2 row tiles, then a >=256 contraction tile, then the
            # least node padding, then the largest tiles.
            key = (min(rows, 2), min(tk, 256), -np_pad, tk, tm)
            if best_key is None or key > best_key:
                best_key, best = key, (tm, tk, np_pad, need)
    if best is None:                                   # tiny-VMEM fallback
        best = (128, 128, np128, _conv_vmem_bytes(128, 128, fi, fh, fo))
    return best


def _vmem_limit_bytes(need):
    cap = _vmem_capacity_bytes()
    return int(min(cap * 9 // 10, max(32 << 20, 2 * need + (4 << 20))))


# ---------------------------------------------------------------------------
# kernels
# ---------------------------------------------------------------------------
def _layer1_kernel(a_ref, x_ref, w1_ref, b1_ref, w2_ref, z_ref, acc_ref):
    """Z = relu((Â @ X) @ W1 + b1) @ W2, accumulated over node k-tiles."""
    k = pl.program_id(1)

    @pl.when(k == 0)
    def _():
        acc_ref[...] = jnp.zeros_like(acc_ref)

    acc_ref[...] += jnp.dot(a_ref[...], x_ref[...],
                            preferred_element_type=jnp.float32)

    @pl.when(k == pl.num_programs(1) - 1)
    def _():
        h1 = jnp.maximum(
            jnp.dot(acc_ref[...].astype(jnp.bfloat16), w1_ref[...],
                    preferred_element_type=jnp.float32) + b1_ref[...], 0.0)
        # fuse W2 of the second GCNConv -> layer 2 is a pure Â accumulation
        z_ref[...] = jnp.dot(h1.astype(jnp.bfloat16), w2_ref[...],
                             preferred_element_type=jnp.float32
                             ).astype(z_ref.dtype)


def _layer2_kernel(a_ref, z_ref, b2_ref, o_ref, acc_ref):
    """H2 = relu(Â @ Z + b2) — Z = H1 @ W2 was already fused into layer 1."""
    k = pl.program_id(1)

    @pl.when(k == 0)
    def _():
        acc_ref[...] = jnp.zeros_like(acc_ref)

    acc_ref[...] += jnp.dot(a_ref[...], z_ref[...],
                            preferred_element_type=jnp.float32)

    @pl.when(k == pl.num_programs(1) - 1)
    def _():
        o_ref[...] = jnp.maximum(acc_ref[...] + b2_ref[...],
                                 0.0).astype(o_ref.dtype)


def _pool_fc_kernel(p_ref, h_ref, wfc_ref, bfc_ref, o_ref, acc_ref):
    """global_mean_pool (dense P) + Linear + log_softmax, node-tiled."""
    k = pl.program_id(0)

    @pl.when(k == 0)
    def _():
        acc_ref[...] = jnp.zeros_like(acc_ref)

    acc_ref[...] += jnp.dot(p_ref[...], h_ref[...],
                            preferred_element_type=jnp.float32)

    @pl.when(k == pl.num_programs(0) - 1)
    def _():
        logits = jnp.dot(acc_ref[...].astype(jnp.bfloat16), wfc_ref[...],
                         preferred_element_type=jnp.float32) + bfc_ref[...]
        # padded class columns carry a -1e9 bias -> exp() underflows to 0
        m = jnp.max(logits, axis=-1, keepdims=True)
        z = logits - m
        lse = jnp.log(jnp.sum(jnp.exp(z), axis=-1, keepdims=True))
        o_ref[...] = z - lse


# ---------------------------------------------------------------------------
# pallas_call wrappers
# ---------------------------------------------------------------------------
def _gcn_layer1(a_p, x_p, w1_p, b1_p, w2_p, *, tm, tk, vmem_limit):
    np_pad, fi = x_p.shape
    fh = w1_p.shape[1]
    fo = w2_p.shape[1]
    return pl.pallas_call(
        _layer1_kernel,
        out_shape=jax.ShapeDtypeStruct((np_pad, fo), jnp.bfloat16),
        grid_spec=pltpu.PrefetchScalarGridSpec(
            num_scalar_prefetch=0,
            grid=(np_pad // tm, np_pad // tk),
            in_specs=[
                pl.BlockSpec((tm, tk), lambda i, k: (i, k)),     # Â tile
                pl.BlockSpec((tk, fi), lambda i, k: (k, 0)),     # X k-tile
                pl.BlockSpec((fi, fh), lambda i, k: (0, 0)),     # W1 (resident)
                pl.BlockSpec((1, fh), lambda i, k: (0, 0)),      # b1
                pl.BlockSpec((fh, fo), lambda i, k: (0, 0)),     # W2 (resident)
            ],
            out_specs=pl.BlockSpec((tm, fo), lambda i, k: (i, 0)),
            scratch_shapes=[pltpu.VMEM((tm, fi), jnp.float32)],
        ),
        compiler_params=pltpu.CompilerParams(
            dimension_semantics=("parallel", "arbitrary"),
            vmem_limit_bytes=vmem_limit),
    )(a_p, x_p, w1_p, b1_p, w2_p)


def _gcn_layer2(a_p, z_p, b2_p, *, tm, tk, vmem_limit):
    np_pad, fo = z_p.shape
    return pl.pallas_call(
        _layer2_kernel,
        out_shape=jax.ShapeDtypeStruct((np_pad, fo), jnp.bfloat16),
        grid_spec=pltpu.PrefetchScalarGridSpec(
            num_scalar_prefetch=0,
            grid=(np_pad // tm, np_pad // tk),
            in_specs=[
                pl.BlockSpec((tm, tk), lambda i, k: (i, k)),     # Â tile
                pl.BlockSpec((tk, fo), lambda i, k: (k, 0)),     # Z k-tile
                pl.BlockSpec((1, fo), lambda i, k: (0, 0)),      # b2
            ],
            out_specs=pl.BlockSpec((tm, fo), lambda i, k: (i, 0)),
            scratch_shapes=[pltpu.VMEM((tm, fo), jnp.float32)],
        ),
        compiler_params=pltpu.CompilerParams(
            dimension_semantics=("parallel", "arbitrary"),
            vmem_limit_bytes=vmem_limit),
    )(a_p, z_p, b2_p)


def _pool_fc(pool_p, h2_p, wfc_p, bfc_p, *, tk, vmem_limit):
    gp, np_pad = pool_p.shape
    fo = h2_p.shape[1]
    cp = wfc_p.shape[1]
    return pl.pallas_call(
        _pool_fc_kernel,
        out_shape=jax.ShapeDtypeStruct((gp, cp), jnp.float32),
        grid_spec=pltpu.PrefetchScalarGridSpec(
            num_scalar_prefetch=0,
            grid=(np_pad // tk,),
            in_specs=[
                pl.BlockSpec((gp, tk), lambda k: (0, k)),        # pool k-tile
                pl.BlockSpec((tk, fo), lambda k: (k, 0)),        # H2 k-tile
                pl.BlockSpec((fo, cp), lambda k: (0, 0)),        # FC weight
                pl.BlockSpec((1, cp), lambda k: (0, 0)),         # FC bias
            ],
            out_specs=pl.BlockSpec((gp, cp), lambda k: (0, 0)),
            scratch_shapes=[pltpu.VMEM((gp, fo), jnp.float32)],
        ),
        compiler_params=pltpu.CompilerParams(
            dimension_semantics=("arbitrary",),
            vmem_limit_bytes=vmem_limit),
    )(pool_p, h2_p, wfc_p, bfc_p)


# ---------------------------------------------------------------------------
# graph preprocessing (built directly padded + bf16: no second staging copy)
# ---------------------------------------------------------------------------
def _build_normalized_adjacency(edge_index, num_nodes, padded_nodes):
    """Padded dense Â = D^-1/2 (A + I) D^-1/2, matching PyG GCNConv defaults."""
    src, dst = edge_index
    a = jnp.zeros((padded_nodes, padded_nodes), jnp.float32)
    a = a.at[dst, src].add(1.0)            # duplicate edges add, like gcn_norm
    ids = jnp.arange(num_nodes)
    a = a.at[ids, ids].add(1.0)            # self loops on real nodes only
    deg = jnp.sum(a, axis=1)
    dinv = jnp.where(deg > 0, jax.lax.rsqrt(deg), 0.0)
    return (dinv[:, None] * a * dinv[None, :]).astype(jnp.bfloat16)


def _build_pool_matrix(batch, padded_graphs, padded_nodes):
    """Padded dense (Gp, Np) mean-pool matrix (rows carry 1/|graph g|)."""
    n = batch.shape[0]
    onehot = jnp.zeros((padded_graphs, padded_nodes), jnp.float32)
    onehot = onehot.at[batch, jnp.arange(n)].add(1.0)
    counts = jnp.sum(onehot, axis=1, keepdims=True)
    return (onehot / jnp.maximum(counts, 1.0)).astype(jnp.bfloat16)


# ---------------------------------------------------------------------------
# forward
# ---------------------------------------------------------------------------
@functools.partial(jax.jit, static_argnames=("dims",))
def _forward_impl(x, edge_index, batch, params, *, dims):
    (num_nodes, num_graphs, num_classes,
     fi, fh, fo, cp, gp, np_pad, tm, tk, vmem_limit) = dims
    w1, b1, w2, b2, wfc, bfc = params

    # padded bf16 MXU operands; biases stay f32 (f32 accumulation).
    a_p = _build_normalized_adjacency(edge_index, num_nodes, np_pad)
    pool_p = _build_pool_matrix(batch, gp, np_pad)
    x_p = _pad_to(x, (np_pad, fi)).astype(jnp.bfloat16)
    w1_p = _pad_to(w1, (fi, fh)).astype(jnp.bfloat16)
    b1_p = _pad_to(b1, (1, fh)).astype(jnp.float32)
    w2_p = _pad_to(w2, (fh, fo)).astype(jnp.bfloat16)
    b2_p = _pad_to(b2, (1, fo)).astype(jnp.float32)
    wfc_p = _pad_to(wfc.T, (fo, cp)).astype(jnp.bfloat16)
    bfc_p = jnp.full((1, cp), -1e9, jnp.float32).at[:, :num_classes].set(bfc)

    # layer 1 (reassociated, W2 fused in the epilogue): Z = relu(ÂXW1 + b1)W2
    z = _gcn_layer1(a_p, x_p, w1_p, b1_p, w2_p, tm=tm, tk=tk,
                    vmem_limit=vmem_limit)
    # layer 2 (pure Â accumulation): H2 = relu(Â Z + b2)
    h2 = _gcn_layer2(a_p, z, b2_p, tm=tm, tk=tk, vmem_limit=vmem_limit)
    # global_mean_pool + fc + log_softmax, tiled over the node axis
    logp = _pool_fc(pool_p, h2, wfc_p, bfc_p, tk=max(tm, tk),
                    vmem_limit=vmem_limit)
    return logp[:num_graphs, :num_classes]


def gcn_forward(x, edge_index, batch, params, *, num_graphs, num_classes):
    num_nodes, in_dim = x.shape
    hid_dim = params[0].shape[1]
    out_dim = params[2].shape[1]
    fi, fh, fo = (_round_up(d, 128) for d in (in_dim, hid_dim, out_dim))
    cp = _round_up(num_classes, 128)     # lane-dense output slab
    gp = _round_up(num_graphs, 8)        # sublane-friendly graph axis
    # Layer 1 uses the (Â@X)@W1 ordering: with padded widths fi <= fh (incl.
    # ties, per review) it is the cheaper and MXU-friendlier order.
    # TODO(synk): if fi_pad > fh_pad, pre-transform X@W1 once instead.
    tm, tk, np_pad, need = _choose_conv_tiling(num_nodes, fi, fh, fo)
    vmem_limit = _vmem_limit_bytes(need)
    dims = (num_nodes, num_graphs, num_classes,
            fi, fh, fo, cp, gp, np_pad, tm, tk, vmem_limit)
    return _forward_impl(x, edge_index, batch, params, dims=dims)


# ---------------------------------------------------------------------------
# pure-JAX f32 reference (same math as the torch module)
# ---------------------------------------------------------------------------
def _reference_forward(x, edge_index, batch, params, num_graphs):
    w1, b1, w2, b2, wfc, bfc = params
    n = x.shape[0]
    src, dst = edge_index
    a = jnp.zeros((n, n), jnp.float32).at[dst, src].add(1.0) + jnp.eye(n)
    deg = jnp.sum(a, axis=1)
    dinv = jnp.where(deg > 0, 1.0 / jnp.sqrt(deg), 0.0)
    a_hat = dinv[:, None] * a * dinv[None, :]
    h = jnp.maximum(a_hat @ (x @ w1) + b1, 0.0)
    h = jnp.maximum(a_hat @ (h @ w2) + b2, 0.0)
    onehot = (batch[None, :] == jnp.arange(num_graphs)[:, None]).astype(jnp.float32)
    pooled = (onehot @ h) / jnp.maximum(onehot.sum(axis=1, keepdims=True), 1.0)
    logits = pooled @ wfc.T + bfc
    return jax.nn.log_softmax(logits, axis=1)


if __name__ == "__main__":
    # ---- small deterministic problem: 2 graphs of 8 nodes each ----
    N = 16
    G = 2
    IN_DIM, HID_DIM, OUT_DIM, NUM_CLASSES = 8, 32, 16, 4

    batch = jnp.concatenate([jnp.zeros(8, jnp.int32), jnp.ones(8, jnp.int32)])

    # undirected ring edges within each graph
    edges = []
    for base in (0, 8):
        for i in range(8):
            a, b = base + i, base + (i + 1) % 8
            edges.append((a, b))
            edges.append((b, a))
    edge_index = jnp.array(edges, jnp.int32).T            # (2, E)

    key = jax.random.PRNGKey(0)
    kx, k1, kb1, k2, kb2, kfc, kbfc = jax.random.split(key, 7)

    x = jax.random.normal(kx, (N, IN_DIM), jnp.float32)
    w1 = jax.random.normal(k1, (IN_DIM, HID_DIM), jnp.float32) * 0.1
    b1 = jax.random.normal(kb1, (1, HID_DIM), jnp.float32) * 0.1
    w2 = jax.random.normal(k2, (HID_DIM, OUT_DIM), jnp.float32) * 0.1
    b2 = jax.random.normal(kb2, (1, OUT_DIM), jnp.float32) * 0.1
    wfc = jax.random.normal(kfc, (NUM_CLASSES, OUT_DIM), jnp.float32) * 0.1
    bfc = jax.random.normal(kbfc, (1, NUM_CLASSES), jnp.float32) * 0.1
    y = jnp.array([0, 1], jnp.int32)                       # data.y (passthrough)

    params = (w1, b1, w2, b2, wfc, bfc)

    log_probs = gcn_forward(x, edge_index, batch, params,
                            num_graphs=G, num_classes=NUM_CLASSES)
    log_probs = jax.block_until_ready(log_probs)

    # forward returns (log_probs, y) like the torch module
    out = (log_probs, y)

    # sanity: shape, finiteness, rows sum to 1 in prob space, close to f32 ref
    ref = _reference_forward(x, edge_index, batch, params, G)
    row_sums = jnp.sum(jnp.exp(log_probs), axis=1)
    assert log_probs.shape == (G, NUM_CLASSES)
    assert bool(jnp.all(jnp.isfinite(log_probs)))
    assert bool(jnp.all(jnp.abs(row_sums - 1.0) < 1e-5))
    max_err = float(jnp.max(jnp.abs(log_probs - ref)))
    assert max_err < 5e-2, f"mismatch vs f32 reference: {max_err}"

    print("KERNEL_OK")
</pallas_src>

<mosaic_0001>
module attributes {stable_mosaic.version = 11 : i64} {
  func.func private @main(%arg0: i32) attributes {dimension_semantics = [#tpu.dimension_semantics<core_parallel>], iteration_bounds = array<i64: 2>, tpu.core_type = #tpu.core_type<sc_scalar_subcore>, window_params = []} {
    return
  }
}

module attributes {stable_mosaic.version = 11 : i64} {
  func.func private @main(%arg0: i32) attributes {dimension_semantics = [#tpu.dimension_semantics<core_parallel>], iteration_bounds = array<i64: 2>, tpu.core_type = #tpu.core_type<sc_scalar_subcore>, window_params = []} {
    return
  }
}

module attributes {stable_mosaic.version = 11 : i64} {
  func.func @_layer1_kernel(%arg0: i32, %arg1: i32, %arg2: memref<128x128xbf16, #tpu.memory_space<vmem>>, %arg3: memref<128x128xbf16, #tpu.memory_space<vmem>>, %arg4: memref<128x128xbf16, #tpu.memory_space<vmem>>, %arg5: memref<1x128xf32, #tpu.memory_space<vmem>>, %arg6: memref<128x128xbf16, #tpu.memory_space<vmem>>, %arg7: memref<128x128xbf16, #tpu.memory_space<vmem>>, %arg8: memref<128x128xf32, #tpu.memory_space<vmem>>) attributes {dimension_semantics = [#tpu.dimension_semantics<parallel>, #tpu.dimension_semantics<arbitrary>], iteration_bounds = array<i64: 1, 1>, scalar_prefetch = 0 : i64, scratch_operands = 1 : i64, tpu.core_type = #tpu.core_type<tc>, window_params = [{transform_indices = @transform_0, window_bounds = array<i64: 128, 128>}, {transform_indices = @transform_1, window_bounds = array<i64: 128, 128>}, {pipeline_mode = #tpu.pipeline_mode<synchronous>, transform_indices = @transform_2, window_bounds = array<i64: 128, 128>}, {pipeline_mode = #tpu.pipeline_mode<synchronous>, transform_indices = @transform_3, window_bounds = array<i64: 1, 128>}, {pipeline_mode = #tpu.pipeline_mode<synchronous>, transform_indices = @transform_4, window_bounds = array<i64: 128, 128>}, {transform_indices = @transform_5, window_bounds = array<i64: 128, 128>}]} {
    %c0_i32 = arith.constant 0 : i32
    %0 = arith.cmpi eq, %arg1, %c0_i32 : i32
    %1 = arith.extui %0 : i1 to i32
    %c0_i32_0 = arith.constant 0 : i32
    %2 = arith.cmpi ne, %1, %c0_i32_0 : i32
    scf.if %2 {
      %cst_10 = arith.constant 0.000000e+00 : f32
      %12 = vector.broadcast %cst_10 : f32 to vector<128x128xf32>
      %c0_11 = arith.constant 0 : index
      %c0_12 = arith.constant 0 : index
      %13 = vector.load %arg8[%c0_11, %c0_12] : memref<128x128xf32, #tpu.memory_space<vmem>>, vector<128x128xf32>
      tpu.vector_store %arg8[%c0_11, %c0_12], %12 {strides = array<i32>} : memref<128x128xf32, #tpu.memory_space<vmem>>, vector<128x128xf32>,
    } else {
    }
    %c0 = arith.constant 0 : index
    %c0_1 = arith.constant 0 : index
    %3 = vector.load %arg8[%c0, %c0_1] : memref<128x128xf32, #tpu.memory_space<vmem>>, vector<128x128xf32>
    %c0_2 = arith.constant 0 : index
    %c0_3 = arith.constant 0 : index
    %4 = vector.load %arg2[%c0_2, %c0_3] : memref<128x128xbf16, #tpu.memory_space<vmem>>, vector<128x128xbf16>
    %c0_4 = arith.constant 0 : index
    %c0_5 = arith.constant 0 : index
    %5 = vector.load %arg3[%c0_4, %c0_5] : memref<128x128xbf16, #tpu.memory_space<vmem>>, vector<128x128xbf16>
    %cst = arith.constant dense<0.000000e+00> : vector<128x128xf32>
    %6 = tpu.matmul %4, %5, %cst {dimension_numbers = #tpu.dot_dimension_numbers<[1], [0], [0], [1], [0, 0, 1, 1], [], []>} : vector<128x128xbf16>, vector<128x128xbf16>, vector<128x128xf32> -> vector<128x128xf32>
    %7 = arith.addf %3, %6 : vector<128x128xf32>
    %c0_6 = arith.constant 0 : index
    %c0_7 = arith.constant 0 : index
    %8 = vector.load %arg8[%c0_6, %c0_7] : memref<128x128xf32, #tpu.memory_space<vmem>>, vector<128x128xf32>
    tpu.vector_store %arg8[%c0_6, %c0_7], %7 {strides = array<i32>} : memref<128x128xf32, #tpu.memory_space<vmem>>, vector<128x128xf32>,
    %c0_i32_8 = arith.constant 0 : i32
    %9 = arith.cmpi eq, %arg1, %c0_i32_8 : i32
    %10 = arith.extui %9 : i1 to i32
    %c0_i32_9 = arith.constant 0 : i32
    %11 = arith.cmpi ne, %10, %c0_i32_9 : i32
    scf.if %11 {
      %c0_10 = arith.constant 0 : index
      %c0_11 = arith.constant 0 : index
      %12 = vector.load %arg8[%c0_10, %c0_11] : memref<128x128xf32, #tpu.memory_space<vmem>>, vector<128x128xf32>
      %13 = arith.truncf %12 : vector<128x128xf32> to vector<128x128xbf16>
      %c0_12 = arith.constant 0 : index
      %c0_13 = arith.constant 0 : index
      %14 = vector.load %arg4[%c0_12, %c0_13] : memref<128x128xbf16, #tpu.memory_space<vmem>>, vector<128x128xbf16>
      %cst_14 = arith.constant dense<0.000000e+00> : vector<128x128xf32>
      %15 = tpu.matmul %13, %14, %cst_14 {dimension_numbers = #tpu.dot_dimension_numbers<[1], [0], [0], [1], [0, 0, 1, 1], [], []>} : vector<128x128xbf16>, vector<128x128xbf16>, vector<128x128xf32> -> vector<128x128xf32>
      %c0_15 = arith.constant 0 : index
      %c0_16 = arith.constant 0 : index
      %16 = vector.load %arg5[%c0_15, %c0_16] : memref<1x128xf32, #tpu.memory_space<vmem>>, vector<1x128xf32>
      %17 = vector.broadcast %16 : vector<1x128xf32> to vector<128x128xf32>
      %18 = arith.addf %15, %17 : vector<128x128xf32>
      %cst_17 = arith.constant 0.000000e+00 : f32
      %19 = vector.broadcast %cst_17 : f32 to vector<128x128xf32>
      %20 = arith.maximumf %18, %19 : vector<128x128xf32>
      %21 = arith.truncf %20 : vector<128x128xf32> to vector<128x128xbf16>
      %c0_18 = arith.constant 0 : index
      %c0_19 = arith.constant 0 : index
      %22 = vector.load %arg6[%c0_18, %c0_19] : memref<128x128xbf16, #tpu.memory_space<vmem>>, vector<128x128xbf16>
      %cst_20 = arith.constant dense<0.000000e+00> : vector<128x128xf32>
      %23 = tpu.matmul %21, %22, %cst_20 {dimension_numbers = #tpu.dot_dimension_numbers<[1], [0], [0], [1], [0, 0, 1, 1], [], []>} : vector<128x128xbf16>, vector<128x128xbf16>, vector<128x128xf32> -> vector<128x128xf32>
      %24 = arith.truncf %23 : vector<128x128xf32> to vector<128x128xbf16>
      %c0_21 = arith.constant 0 : index
      %c0_22 = arith.constant 0 : index
      %25 = vector.load %arg7[%c0_21, %c0_22] : memref<128x128xbf16, #tpu.memory_space<vmem>>, vector<128x128xbf16>
      tpu.vector_store %arg7[%c0_21, %c0_22], %24 {strides = array<i32>} : memref<128x128xbf16, #tpu.memory_space<vmem>>, vector<128x128xbf16>,
    } else {
    }
    return
  }
  func.func @transform_0(%arg0: i32, %arg1: i32) -> (i32, i32) {
    %c0_i32 = arith.constant 0 : i32
    return %arg0, %arg1 : i32, i32
  }
  func.func @transform_1(%arg0: i32, %arg1: i32) -> (i32, i32) {
    %c0_i32 = arith.constant 0 : i32
    %c0_i32_0 = arith.constant 0 : i32
    return %arg1, %c0_i32 : i32, i32
  }
  func.func @transform_2(%arg0: i32, %arg1: i32) -> (i32, i32) {
    %c0_i32 = arith.constant 0 : i32
    %c0_i32_0 = arith.constant 0 : i32
    %c0_i32_1 = arith.constant 0 : i32
    return %c0_i32, %c0_i32_0 : i32, i32
  }
  func.func @transform_3(%arg0: i32, %arg1: i32) -> (i32, i32) {
    %c0_i32 = arith.constant 0 : i32
    %c0_i32_0 = arith.constant 0 : i32
    %c0_i32_1 = arith.constant 0 : i32
    return %c0_i32, %c0_i32_0 : i32, i32
  }
  func.func @transform_4(%arg0: i32, %arg1: i32) -> (i32, i32) {
    %c0_i32 = arith.constant 0 : i32
    %c0_i32_0 = arith.constant 0 : i32
    %c0_i32_1 = arith.constant 0 : i32
    return %c0_i32, %c0_i32_0 : i32, i32
  }
  func.func @transform_5(%arg0: i32, %arg1: i32) -> (i32, i32) {
    %c0_i32 = arith.constant 0 : i32
    %c0_i32_0 = arith.constant 0 : i32
    return %arg0, %c0_i32 : i32, i32
  }
}

module attributes {stable_mosaic.version = 11 : i64} {
  func.func @_layer2_kernel(%arg0: i32, %arg1: i32, %arg2: memref<128x128xbf16, #tpu.memory_space<vmem>>, %arg3: memref<128x128xbf16, #tpu.memory_space<vmem>>, %arg4: memref<1x128xf32, #tpu.memory_space<vmem>>, %arg5: memref<128x128xbf16, #tpu.memory_space<vmem>>, %arg6: memref<128x128xf32, #tpu.memory_space<vmem>>) attributes {dimension_semantics = [#tpu.dimension_semantics<parallel>, #tpu.dimension_semantics<arbitrary>], iteration_bounds = array<i64: 1, 1>, scalar_prefetch = 0 : i64, scratch_operands = 1 : i64, tpu.core_type = #tpu.core_type<tc>, window_params = [{transform_indices = @transform_0, window_bounds = array<i64: 128, 128>}, {transform_indices = @transform_1, window_bounds = array<i64: 128, 128>}, {pipeline_mode = #tpu.pipeline_mode<synchronous>, transform_indices = @transform_2, window_bounds = array<i64: 1, 128>}, {transform_indices = @transform_3, window_bounds = array<i64: 128, 128>}]} {
    %c0_i32 = arith.constant 0 : i32
    %0 = arith.cmpi eq, %arg1, %c0_i32 : i32
    %1 = arith.extui %0 : i1 to i32
    %c0_i32_0 = arith.constant 0 : i32
    %2 = arith.cmpi ne, %1, %c0_i32_0 : i32
    scf.if %2 {
      %cst_10 = arith.constant 0.000000e+00 : f32
      %12 = vector.broadcast %cst_10 : f32 to vector<128x128xf32>
      %c0_11 = arith.constant 0 : index
      %c0_12 = arith.constant 0 : index
      %13 = vector.load %arg6[%c0_11, %c0_12] : memref<128x128xf32, #tpu.memory_space<vmem>>, vector<128x128xf32>
      tpu.vector_store %arg6[%c0_11, %c0_12], %12 {strides = array<i32>} : memref<128x128xf32, #tpu.memory_space<vmem>>, vector<128x128xf32>,
    } else {
    }
    %c0 = arith.constant 0 : index
    %c0_1 = arith.constant 0 : index
    %3 = vector.load %arg6[%c0, %c0_1] : memref<128x128xf32, #tpu.memory_space<vmem>>, vector<128x128xf32>
    %c0_2 = arith.constant 0 : index
    %c0_3 = arith.constant 0 : index
    %4 = vector.load %arg2[%c0_2, %c0_3] : memref<128x128xbf16, #tpu.memory_space<vmem>>, vector<128x128xbf16>
    %c0_4 = arith.constant 0 : index
    %c0_5 = arith.constant 0 : index
    %5 = vector.load %arg3[%c0_4, %c0_5] : memref<128x128xbf16, #tpu.memory_space<vmem>>, vector<128x128xbf16>
    %cst = arith.constant dense<0.000000e+00> : vector<128x128xf32>
    %6 = tpu.matmul %4, %5, %cst {dimension_numbers = #tpu.dot_dimension_numbers<[1], [0], [0], [1], [0, 0, 1, 1], [], []>} : vector<128x128xbf16>, vector<128x128xbf16>, vector<128x128xf32> -> vector<128x128xf32>
    %7 = arith.addf %3, %6 : vector<128x128xf32>
    %c0_6 = arith.constant 0 : index
    %c0_7 = arith.constant 0 : index
    %8 = vector.load %arg6[%c0_6, %c0_7] : memref<128x128xf32, #tpu.memory_space<vmem>>, vector<128x128xf32>
    tpu.vector_store %arg6[%c0_6, %c0_7], %7 {strides = array<i32>} : memref<128x128xf32, #tpu.memory_space<vmem>>, vector<128x128xf32>,
    %c0_i32_8 = arith.constant 0 : i32
    %9 = arith.cmpi eq, %arg1, %c0_i32_8 : i32
    %10 = arith.extui %9 : i1 to i32
    %c0_i32_9 = arith.constant 0 : i32
    %11 = arith.cmpi ne, %10, %c0_i32_9 : i32
    scf.if %11 {
      %c0_10 = arith.constant 0 : index
      %c0_11 = arith.constant 0 : index
      %12 = vector.load %arg6[%c0_10, %c0_11] : memref<128x128xf32, #tpu.memory_space<vmem>>, vector<128x128xf32>
      %c0_12 = arith.constant 0 : index
      %c0_13 = arith.constant 0 : index
      %13 = vector.load %arg4[%c0_12, %c0_13] : memref<1x128xf32, #tpu.memory_space<vmem>>, vector<1x128xf32>
      %14 = vector.broadcast %13 : vector<1x128xf32> to vector<128x128xf32>
      %15 = arith.addf %12, %14 : vector<128x128xf32>
      %cst_14 = arith.constant 0.000000e+00 : f32
      %16 = vector.broadcast %cst_14 : f32 to vector<128x128xf32>
      %17 = arith.maximumf %15, %16 : vector<128x128xf32>
      %18 = arith.truncf %17 : vector<128x128xf32> to vector<128x128xbf16>
      %c0_15 = arith.constant 0 : index
      %c0_16 = arith.constant 0 : index
      %19 = vector.load %arg5[%c0_15, %c0_16] : memref<128x128xbf16, #tpu.memory_space<vmem>>, vector<128x128xbf16>
      tpu.vector_store %arg5[%c0_15, %c0_16], %18 {strides = array<i32>} : memref<128x128xbf16, #tpu.memory_space<vmem>>, vector<128x128xbf16>,
    } else {
    }
    return
  }
  func.func @transform_0(%arg0: i32, %arg1: i32) -> (i32, i32) {
    %c0_i32 = arith.constant 0 : i32
    return %arg0, %arg1 : i32, i32
  }
  func.func @transform_1(%arg0: i32, %arg1: i32) -> (i32, i32) {
    %c0_i32 = arith.constant 0 : i32
    %c0_i32_0 = arith.constant 0 : i32
    return %arg1, %c0_i32 : i32, i32
  }
  func.func @transform_2(%arg0: i32, %arg1: i32) -> (i32, i32) {
    %c0_i32 = arith.constant 0 : i32
    %c0_i32_0 = arith.constant 0 : i32
    %c0_i32_1 = arith.constant 0 : i32
    return %c0_i32, %c0_i32_0 : i32, i32
  }
  func.func @transform_3(%arg0: i32, %arg1: i32) -> (i32, i32) {
    %c0_i32 = arith.constant 0 : i32
    %c0_i32_0 = arith.constant 0 : i32
    return %arg0, %c0_i32 : i32, i32
  }
}

module attributes {stable_mosaic.version = 11 : i64} {
  func.func @_pool_fc_kernel(%arg0: i32, %arg1: memref<8x128xbf16, #tpu.memory_space<vmem>>, %arg2: memref<128x128xbf16, #tpu.memory_space<vmem>>, %arg3: memref<128x128xbf16, #tpu.memory_space<vmem>>, %arg4: memref<1x128xf32, #tpu.memory_space<vmem>>, %arg5: memref<8x128xf32, #tpu.memory_space<vmem>>, %arg6: memref<8x128xf32, #tpu.memory_space<vmem>>) attributes {dimension_semantics = [#tpu.dimension_semantics<arbitrary>], iteration_bounds = array<i64: 1>, scalar_prefetch = 0 : i64, scratch_operands = 1 : i64, tpu.core_type = #tpu.core_type<tc>, window_params = [{transform_indices = @transform_0, window_bounds = array<i64: 8, 128>}, {transform_indices = @transform_1, window_bounds = array<i64: 128, 128>}, {pipeline_mode = #tpu.pipeline_mode<synchronous>, transform_indices = @transform_2, window_bounds = array<i64: 128, 128>}, {pipeline_mode = #tpu.pipeline_mode<synchronous>, transform_indices = @transform_3, window_bounds = array<i64: 1, 128>}, {pipeline_mode = #tpu.pipeline_mode<synchronous>, transform_indices = @transform_4, window_bounds = array<i64: 8, 128>}]} {
    %c0_i32 = arith.constant 0 : i32
    %0 = arith.cmpi eq, %arg0, %c0_i32 : i32
    %1 = arith.extui %0 : i1 to i32
    %c0_i32_0 = arith.constant 0 : i32
    %2 = arith.cmpi ne, %1, %c0_i32_0 : i32
    scf.if %2 {
      %cst_10 = arith.constant 0.000000e+00 : f32
      %12 = vector.broadcast %cst_10 : f32 to vector<8x128xf32>
      %c0_11 = arith.constant 0 : index
      %c0_12 = arith.constant 0 : index
      %13 = vector.load %arg6[%c0_11, %c0_12] : memref<8x128xf32, #tpu.memory_space<vmem>>, vector<8x128xf32>
      tpu.vector_store %arg6[%c0_11, %c0_12], %12 {strides = array<i32>} : memref<8x128xf32, #tpu.memory_space<vmem>>, vector<8x128xf32>,
    } else {
    }
    %c0 = arith.constant 0 : index
    %c0_1 = arith.constant 0 : index
    %3 = vector.load %arg6[%c0, %c0_1] : memref<8x128xf32, #tpu.memory_space<vmem>>, vector<8x128xf32>
    %c0_2 = arith.constant 0 : index
    %c0_3 = arith.constant 0 : index
    %4 = vector.load %arg1[%c0_2, %c0_3] : memref<8x128xbf16, #tpu.memory_space<vmem>>, vector<8x128xbf16>
    %c0_4 = arith.constant 0 : index
    %c0_5 = arith.constant 0 : index
    %5 = vector.load %arg2[%c0_4, %c0_5] : memref<128x128xbf16, #tpu.memory_space<vmem>>, vector<128x128xbf16>
    %cst = arith.constant dense<0.000000e+00> : vector<8x128xf32>
    %6 = tpu.matmul %4, %5, %cst {dimension_numbers = #tpu.dot_dimension_numbers<[1], [0], [0], [1], [0, 0, 1, 1], [], []>} : vector<8x128xbf16>, vector<128x128xbf16>, vector<8x128xf32> -> vector<8x128xf32>
    %7 = arith.addf %3, %6 : vector<8x128xf32>
    %c0_6 = arith.constant 0 : index
    %c0_7 = arith.constant 0 : index
    %8 = vector.load %arg6[%c0_6, %c0_7] : memref<8x128xf32, #tpu.memory_space<vmem>>, vector<8x128xf32>
    tpu.vector_store %arg6[%c0_6, %c0_7], %7 {strides = array<i32>} : memref<8x128xf32, #tpu.memory_space<vmem>>, vector<8x128xf32>,
    %c0_i32_8 = arith.constant 0 : i32
    %9 = arith.cmpi eq, %arg0, %c0_i32_8 : i32
    %10 = arith.extui %9 : i1 to i32
    %c0_i32_9 = arith.constant 0 : i32
    %11 = arith.cmpi ne, %10, %c0_i32_9 : i32
    scf.if %11 {
      %c0_10 = arith.constant 0 : index
      %c0_11 = arith.constant 0 : index
      %12 = vector.load %arg6[%c0_10, %c0_11] : memref<8x128xf32, #tpu.memory_space<vmem>>, vector<8x128xf32>
      %13 = arith.truncf %12 : vector<8x128xf32> to vector<8x128xbf16>
      %c0_12 = arith.constant 0 : index
      %c0_13 = arith.constant 0 : index
      %14 = vector.load %arg3[%c0_12, %c0_13] : memref<128x128xbf16, #tpu.memory_space<vmem>>, vector<128x128xbf16>
      %cst_14 = arith.constant dense<0.000000e+00> : vector<8x128xf32>
      %15 = tpu.matmul %13, %14, %cst_14 {dimension_numbers = #tpu.dot_dimension_numbers<[1], [0], [0], [1], [0, 0, 1, 1], [], []>} : vector<8x128xbf16>, vector<128x128xbf16>, vector<8x128xf32> -> vector<8x128xf32>
      %c0_15 = arith.constant 0 : index
      %c0_16 = arith.constant 0 : index
      %16 = vector.load %arg4[%c0_15, %c0_16] : memref<1x128xf32, #tpu.memory_space<vmem>>, vector<1x128xf32>
      %17 = vector.broadcast %16 : vector<1x128xf32> to vector<8x128xf32>
      %18 = arith.addf %15, %17 : vector<8x128xf32>
      %cst_17 = arith.constant dense<0xFF800000> : vector<8xf32>
      %19 = vector.multi_reduction <maximumf>, %18, %cst_17 [1] : vector<8x128xf32> to vector<8xf32>
      %20 = vector.shape_cast %19 : vector<8xf32> to vector<8x1xf32>
      %21 = vector.broadcast %20 : vector<8x1xf32> to vector<8x128xf32>
      %22 = arith.subf %18, %21 : vector<8x128xf32>
      %23 = math.exp %22 : vector<8x128xf32>
      %cst_18 = arith.constant dense<0.000000e+00> : vector<8xf32>
      %24 = vector.multi_reduction <add>, %23, %cst_18 [1] : vector<8x128xf32> to vector<8xf32>
      %25 = vector.shape_cast %24 : vector<8xf32> to vector<8x1xf32>
      %26 = math.log %25 : vector<8x1xf32>
      %27 = vector.broadcast %26 : vector<8x1xf32> to vector<8x128xf32>
      %28 = arith.subf %22, %27 : vector<8x128xf32>
      %c0_19 = arith.constant 0 : index
      %c0_20 = arith.constant 0 : index
      %29 = vector.load %arg5[%c0_19, %c0_20] : memref<8x128xf32, #tpu.memory_space<vmem>>, vector<8x128xf32>
      tpu.vector_store %arg5[%c0_19, %c0_20], %28 {strides = array<i32>} : memref<8x128xf32, #tpu.memory_space<vmem>>, vector<8x128xf32>,
    } else {
    }
    return
  }
  func.func @transform_0(%arg0: i32) -> (i32, i32) {
    %c0_i32 = arith.constant 0 : i32
    %c0_i32_0 = arith.constant 0 : i32
    return %c0_i32, %arg0 : i32, i32
  }
  func.func @transform_1(%arg0: i32) -> (i32, i32) {
    %c0_i32 = arith.constant 0 : i32
    %c0_i32_0 = arith.constant 0 : i32
    return %arg0, %c0_i32 : i32, i32
  }
  func.func @transform_2(%arg0: i32) -> (i32, i32) {
    %c0_i32 = arith.constant 0 : i32
    %c0_i32_0 = arith.constant 0 : i32
    %c0_i32_1 = arith.constant 0 : i32
    return %c0_i32, %c0_i32_0 : i32, i32
  }
  func.func @transform_3(%arg0: i32) -> (i32, i32) {
    %c0_i32 = arith.constant 0 : i32
    %c0_i32_0 = arith.constant 0 : i32
    %c0_i32_1 = arith.constant 0 : i32
    return %c0_i32, %c0_i32_0 : i32, i32
  }
  func.func @transform_4(%arg0: i32) -> (i32, i32) {
    %c0_i32 = arith.constant 0 : i32
    %c0_i32_0 = arith.constant 0 : i32
    %c0_i32_1 = arith.constant 0 : i32
    return %c0_i32, %c0_i32_0 : i32, i32
  }
}

</mosaic_0001>

<bundles_post_ra>
// kernel: _forward_impl.5
= control target key start
LH: loop header
LB: loop body
LE: loop exit
PB: predicated region body
PF: predicated region fallthrough
CT: control target
= control target key end

     0   :  { %v359_v0 = vmov 0.0   ;;  %vm360_vm0 = vmmov 0   ;;  %s443_s1 = inlined_call_operand.vmem [shape: bf16[128,128], index: 1, kind: input, shape index: {}]   ;;  %s444_s2 = inlined_call_operand.vmem [shape: bf16[128,128], index: 2, kind: input, shape index: {}]   ;;  %s445_s0 = inlined_call_operand.vmem [shape: bf16[8,128], index: 0, kind: input, shape index: {}]   ;;  %s446_s3 = inlined_call_operand.vmem [shape: f32[1,128], index: 3, kind: input, shape index: {}]   ;;  %s447_s4 = inlined_call_operand.vmem [shape: f32[8,128], index: 4, kind: output, shape index: {}]  }
   0x1   :  { %297 = vmatprep.subr.bf16.mxu0 %v359_v0  ;;  %v339_v1 = vld [vmem:[%s443_s1] sm:$0xff]   ;;  %313 = vmatprep.mubr.msk.bf16.mxu0 %vm360_vm0, %v359_v0  ;;  %v340_v2 = vld [vmem:[%s443_s1 + $0x8] sm:$0xff]   ;;  %v341_v3 = vld [vmem:[%s443_s1 + $0x10] sm:$0xff]  }
   0x2   :  { %317 = vmatprep.subr.bf16.mxu1 %v359_v0  ;;  %333 = vmatprep.mubr.msk.bf16.mxu1 %vm360_vm0, %v359_v0  ;;  %v347_v4 = vld [vmem:[%s444_s2] sm:$0xff]   ;;  %v342_v5 = vld [vmem:[%s443_s1 + $0x18] sm:$0xff]   ;;  %v348_v6 = vld [vmem:[%s444_s2 + $0x8] sm:$0xff]  }
   0x3   :  { %298 = vmatpush3.bf16.msra.mxu0 %v339_v1  ;;  %318 = vmatpush3.bf16.msra.mxu1 %v347_v4  ;;  %v343_v7 = vld [vmem:[%s443_s1 + $0x20] sm:$0xff]   ;;  %v349_v8 = vld [vmem:[%s444_s2 + $0x10] sm:$0xff]   ;;  %v344_v9 = vld [vmem:[%s443_s1 + $0x28] sm:$0xff]  }
   0x4   :  { %299 = vmatprep.subr.bf16.mxu0 %v359_v0  ;;  %319 = vmatprep.subr.bf16.mxu1 %v359_v0  ;;  %v350_v10 = vld [vmem:[%s444_s2 + $0x18] sm:$0xff]   ;;  %v345_v11 = vld [vmem:[%s443_s1 + $0x30] sm:$0xff]   ;;  %v351_v12 = vld [vmem:[%s444_s2 + $0x20] sm:$0xff]  }
   0x5   :  { %v346_v13 = vld [vmem:[%s443_s1 + $0x38] sm:$0xff]   ;;  %v352_v14 = vld [vmem:[%s444_s2 + $0x28] sm:$0xff]   ;;  %v24_v15 = vld [vmem:[%s445_s0] sm:$0xf] }
   0x6   :  { %v353_v16 = vld [vmem:[%s444_s2 + $0x30] sm:$0xff]   ;;  %v354_v17 = vld [vmem:[%s444_s2 + $0x38] sm:$0xff]   ;;  %v270_v23 = vld [vmem:[%s446_s3] ss:$0 sm:$0xff] }
   0x7   :  { %300 = vmatpush3.bf16.msra.mxu0 %v340_v2  ;;  %320 = vmatpush3.bf16.msra.mxu1 %v348_v6 }
   0x8   :  { %301 = vmatprep.subr.bf16.mxu0 %v359_v0  ;;  %321 = vmatprep.subr.bf16.mxu1 %v359_v0 }
   0xb   :  { %302 = vmatpush3.bf16.msra.mxu0 %v341_v3  ;;  %322 = vmatpush3.bf16.msra.mxu1 %v349_v8 }
   0xc   :  { %303 = vmatprep.subr.bf16.mxu0 %v359_v0  ;;  %323 = vmatprep.subr.bf16.mxu1 %v359_v0 }
   0xf   :  { %304 = vmatpush3.bf16.msra.mxu0 %v342_v5  ;;  %324 = vmatpush3.bf16.msra.mxu1 %v350_v10 }
  0x10   :  { %305 = vmatprep.subr.bf16.mxu0 %v359_v0  ;;  %325 = vmatprep.subr.bf16.mxu1 %v359_v0 }
  0x13   :  { %306 = vmatpush3.bf16.msra.mxu0 %v343_v7  ;;  %326 = vmatpush3.bf16.msra.mxu1 %v351_v12 }
  0x14   :  { %307 = vmatprep.subr.bf16.mxu0 %v359_v0  ;;  %327 = vmatprep.subr.bf16.mxu1 %v359_v0 }
  0x17   :  { %308 = vmatpush3.bf16.msra.mxu0 %v344_v9  ;;  %328 = vmatpush3.bf16.msra.mxu1 %v352_v14 }
  0x18   :  { %309 = vmatprep.subr.bf16.mxu0 %v359_v0  ;;  %329 = vmatprep.subr.bf16.mxu1 %v359_v0 }
  0x1b   :  { %310 = vmatpush3.bf16.msra.mxu0 %v345_v11  ;;  %330 = vmatpush3.bf16.msra.mxu1 %v353_v16 }
  0x1c   :  { %311 = vmatprep.subr.bf16.mxu0 %v359_v0  ;;  %331 = vmatprep.subr.bf16.mxu1 %v359_v0 }
  0x1f   :  { %312 = vmatpush3.bf16.msra.mxu0 %v346_v13  ;;  %332 = vmatpush3.bf16.msra.mxu1 %v354_v17 }
  0x22   :  { %314 = vmatmul.mubr.bf16.vlgmr.msra.gmra.mrb[0].mxu0 %v24_v15 }
  0xf5   :  { %v123_v18 = vpop.f32.mrb[0].mxu0 }
  0xf6   :  { %v135_v19 = vpack.c.bf16 %v123_v18, %v123_v18  ;;  %v315_v20 = vpop.f32.mrb[1].mxu0 }
  0xf7   :  { %v126_v21 = vpop.f32.mrb[2].mxu0 }
  0xf8   :  { %v316_v22 = vpop.f32.mrb[3].mxu0  ;;  %334 = vmatmul.mubr.bf16.vlgmr.msra.gmra.mrb[0].mxu1 %v135_v19 }
 0x1cb   :  { %v241_v24 = vpop.f32.mrb[0].mxu1 }
 0x1cc   :  { %v242_v25 = vadd.f32 %v270_v23, %v241_v24  ;;  %v335_v26 = vpop.f32.mrb[1].mxu1 }
 0x1cd   :  { %v244_v27 = vpop.f32.mrb[2].mxu1 }
 0x1ce   :  { %247 = vmax.xlane.f32.xlu0 %v242_v25  ;;  %v336_v28 = vpop.f32.mrb[3].mxu1 }
 0x25b   :  { %v248_v29 = vpop.xlane.xlu0 %247 }
 0x25c   :  { %v249_v30 = vsub.f32 %v242_v25, %v248_v29 }
 0x25e   :  { %v250_v31 = vmul.f32 1.442695, %v249_v30 }
 0x260   :  { %355 = vpow2.f32 %v250_v31 }
 0x26a   :  { %v356_v32 = vpop.eup %355 }
 0x26b   :  { %252 = vadd.xlane.f32.xlu0 %v356_v32 }
 0x2f8   :  { %v253_v33 = vpop.xlane.xlu0 %252 }
 0x2f9   :  { %357 = vlog2.f32 %v253_v33 }
 0x303   :  { %v358_v34 = vpop.eup %357 }
 0x304   :  { %v255_v35 = vmul.f32 0.6931472, %v358_v34 }
 0x306   :  { %v256_v36 = vsub.f32 %v249_v30, %v255_v35 }
 0x308   :  { %257 = vst [vmem:[%s447_s4] sm:$0xff] %v256_v36 }

// kernel: _forward_impl.4
= control target key start
LH: loop header
LB: loop body
LE: loop exit
PB: predicated region body
PF: predicated region fallthrough
CT: control target
= control target key end

     0   :  { %s721_s1 = inlined_call_operand.vmem [shape: bf16[128,128], index: 1, kind: input, shape index: {}]   ;;  %s722_s0 = inlined_call_operand.vmem [shape: bf16[128,128], index: 0, kind: input, shape index: {}]   ;;  %s723_s2 = inlined_call_operand.vmem [shape: f32[1,128], index: 2, kind: input, shape index: {}]   ;;  %s724_s3 = inlined_call_operand.vmem [shape: bf16[128,128], index: 3, kind: output, shape index: {}]  }
   0x1   :  { %v610_v0 = vld [vmem:[%s721_s1] sm:$0xff]   ;;  %v611_v1 = vld [vmem:[%s721_s1 + $0x8] sm:$0xff]   ;;  %v612_v2 = vld [vmem:[%s721_s1 + $0x10] sm:$0xff]  }
   0x2   :  { %562 = vmatprep.subr.bf16.mxu0 %v610_v0  ;;  %594 = vmatprep.subr.bf16.mxu1 %v610_v0  ;;  %v613_v3 = vld [vmem:[%s721_s1 + $0x18] sm:$0xff]   ;;  %v618_v4 = vld [vmem:[%s722_s0] sm:$0xff]   ;;  %v615_v7 = vld [vmem:[%s721_s1 + $0x28] sm:$0xff]  }
   0x3   :  { %563 = vmatpush3.bf16.msra.mxu0 %v610_v0  ;;  %602 = vmatpush3.bf16.msra.mxu1 %v610_v0  ;;  %v619_v5 = vld [vmem:[%s722_s0 + $0x20] sm:$0xff]   ;;  %v616_v8 = vld [vmem:[%s721_s1 + $0x30] sm:$0xff]   ;;  %v617_v9 = vld [vmem:[%s721_s1 + $0x38] sm:$0xff]  }
   0x4   :  { %564 = vmatprep.subr.bf16.mxu0 %v611_v1  ;;  %595 = vmatprep.subr.bf16.mxu1 %v611_v1  ;;  %v614_v6 = vld [vmem:[%s721_s1 + $0x20] sm:$0xff]   ;;  %v620_v10 = vld [vmem:[%s722_s0 + $0x8] sm:$0xff]   ;;  %v622_v12 = vld [vmem:[%s722_s0 + $0x10] sm:$0xff]  }
   0x5   :  { %578 = vmatprep.mubr.bf16.mxu0 %v618_v4  ;;  %586 = vmatprep.mubr.bf16.mxu1 %v619_v5  ;;  %v621_v11 = vld [vmem:[%s722_s0 + $0x28] sm:$0xff]   ;;  %v623_v13 = vld [vmem:[%s722_s0 + $0x30] sm:$0xff]   ;;  %v624_v14 = vld [vmem:[%s722_s0 + $0x18] sm:$0xff]  }
   0x6   :  { %v625_v15 = vld [vmem:[%s722_s0 + $0x38] sm:$0xff]   ;;  %v466_v16 = vld [vmem:[%s723_s2] ss:$0 sm:$0xff] }
   0x7   :  { %565 = vmatpush3.bf16.msra.mxu0 %v611_v1  ;;  %603 = vmatpush3.bf16.msra.mxu1 %v611_v1 }
   0x8   :  { %566 = vmatprep.subr.bf16.mxu0 %v612_v2  ;;  %596 = vmatprep.subr.bf16.mxu1 %v612_v2 }
   0xb   :  { %567 = vmatpush3.bf16.msra.mxu0 %v612_v2  ;;  %604 = vmatpush3.bf16.msra.mxu1 %v612_v2 }
   0xc   :  { %568 = vmatprep.subr.bf16.mxu0 %v613_v3  ;;  %597 = vmatprep.subr.bf16.mxu1 %v613_v3 }
   0xf   :  { %569 = vmatpush3.bf16.msra.mxu0 %v613_v3  ;;  %605 = vmatpush3.bf16.msra.mxu1 %v613_v3 }
  0x10   :  { %570 = vmatprep.subr.bf16.mxu0 %v614_v6  ;;  %598 = vmatprep.subr.bf16.mxu1 %v614_v6 }
  0x13   :  { %571 = vmatpush3.bf16.msra.mxu0 %v614_v6  ;;  %606 = vmatpush3.bf16.msra.mxu1 %v614_v6 }
  0x14   :  { %572 = vmatprep.subr.bf16.mxu0 %v615_v7  ;;  %599 = vmatprep.subr.bf16.mxu1 %v615_v7 }
  0x17   :  { %573 = vmatpush3.bf16.msra.mxu0 %v615_v7  ;;  %607 = vmatpush3.bf16.msra.mxu1 %v615_v7 }
  0x18   :  { %574 = vmatprep.subr.bf16.mxu0 %v616_v8  ;;  %600 = vmatprep.subr.bf16.mxu1 %v616_v8 }
  0x1b   :  { %575 = vmatpush3.bf16.msra.mxu0 %v616_v8  ;;  %608 = vmatpush3.bf16.msra.mxu1 %v616_v8 }
  0x1c   :  { %576 = vmatprep.subr.bf16.mxu0 %v617_v9  ;;  %601 = vmatprep.subr.bf16.mxu1 %v617_v9 }
  0x1f   :  { %577 = vmatpush3.bf16.msra.mxu0 %v617_v9  ;;  %609 = vmatpush3.bf16.msra.mxu1 %v617_v9 }
  0x22   :  { %579 = vmatmul.mubr.bf16.vlgmr.msra.gmra.mrb[0].mxu0 %v620_v10  ;;  %587 = vmatmul.mubr.bf16.vlgmr.msra.gmra.mrb[0].mxu1 %v621_v11 }
  0x23   :  { %582 = vmatprep.mubr.bf16.mxu0 %v622_v12  ;;  %590 = vmatprep.mubr.bf16.mxu1 %v623_v13 }
  0x2a   :  { %583 = vmatmul.mubr.bf16.gmra.mrb[4].mxu0 %v624_v14  ;;  %591 = vmatmul.mubr.bf16.gmra.mrb[4].mxu1 %v625_v15 }
  0xf5   :  { %v580_v17 = vpop.f32.mrb[0].mxu0  ;;  %v588_v18 = vpop.f32.mrb[0].mxu1 }
  0xf6   :  { %v336_v19 = vadd.f32 %v580_v17, %v466_v16  ;;  %v344_v20 = vadd.f32 %v588_v18, %v466_v16  ;;  %v213_v21 = vpop.f32.mrb[1].mxu0  ;;  %v245_v22 = vpop.f32.mrb[1].mxu1 }
  0xf7   :  { %v334_v23 = vadd.f32 %v466_v16, %v213_v21  ;;  %v342_v24 = vadd.f32 %v466_v16, %v245_v22  ;;  %v581_v25 = vpop.f32.mrb[2].mxu0  ;;  %v589_v26 = vpop.f32.mrb[2].mxu1 }
  0xf8   :  { %v337_v27 = vadd.f32 %v581_v25, %v466_v16  ;;  %v345_v28 = vadd.f32 %v589_v26, %v466_v16  ;;  %v216_v29 = vpop.f32.mrb[3].mxu0  ;;  %v248_v30 = vpop.f32.mrb[3].mxu1  ;;  %v352_v33 = vmax.f32 %v336_v19, 0.0  ;;  %v360_v34 = vmax.f32 %v344_v20, 0.0 }
  0xf9   :  { %v335_v31 = vadd.f32 %v466_v16, %v216_v29  ;;  %v343_v32 = vadd.f32 %v466_v16, %v248_v30  ;;  %v350_v37 = vmax.f32 %v334_v23, 0.0  ;;  %v358_v38 = vmax.f32 %v342_v24, 0.0 }
  0xfa   :  { %v353_v35 = vmax.f32 %v337_v27, 0.0  ;;  %v361_v36 = vmax.f32 %v345_v28, 0.0 }
  0xfb   :  { %v351_v39 = vmax.f32 %v335_v31, 0.0  ;;  %v359_v40 = vmax.f32 %v343_v32, 0.0 }
  0xfc   :  { %v507_v41 = vpack.c.bf16 %v353_v35, %v352_v33  ;;  %v527_v42 = vpack.c.bf16 %v361_v36, %v360_v34 }
  0xfd   :  { %v502_v43 = vpack.c.bf16 %v351_v39, %v350_v37  ;;  %v522_v44 = vpack.c.bf16 %v359_v40, %v358_v38  ;;  %v584_v45 = vpop.f32.mrb[4].mxu0  ;;  %v592_v46 = vpop.f32.mrb[4].mxu1 }
  0xfe   :  { %539 = vst [vmem:[%s724_s3 + $0x8] sm:$0xff] %v507_v41   ;;  %543 = vst [vmem:[%s724_s3 + $0x28] sm:$0xff] %v527_v42   ;;  %v340_v47 = vadd.f32 %v584_v45, %v466_v16  ;;  %v348_v48 = vadd.f32 %v592_v46, %v466_v16  ;;  %v229_v49 = vpop.f32.mrb[5].mxu0  ;;  %v261_v50 = vpop.f32.mrb[5].mxu1 }
  0xff   :  { %503 = vst [vmem:[%s724_s3] sm:$0xff] %v502_v43   ;;  %542 = vst [vmem:[%s724_s3 + $0x20] sm:$0xff] %v522_v44   ;;  %v338_v51 = vadd.f32 %v466_v16, %v229_v49  ;;  %v346_v52 = vadd.f32 %v466_v16, %v261_v50  ;;  %v585_v53 = vpop.f32.mrb[6].mxu0  ;;  %v593_v54 = vpop.f32.mrb[6].mxu1 }
 0x100   :  { %v341_v55 = vadd.f32 %v585_v53, %v466_v16  ;;  %v349_v56 = vadd.f32 %v593_v54, %v466_v16  ;;  %v232_v57 = vpop.f32.mrb[7].mxu0  ;;  %v264_v58 = vpop.f32.mrb[7].mxu1  ;;  %v356_v61 = vmax.f32 %v340_v47, 0.0  ;;  %v364_v62 = vmax.f32 %v348_v48, 0.0 }
 0x101   :  { %v339_v59 = vadd.f32 %v466_v16, %v232_v57  ;;  %v347_v60 = vadd.f32 %v466_v16, %v264_v58  ;;  %v354_v1 = vmax.f32 %v338_v51, 0.0  ;;  %v362_v2 = vmax.f32 %v346_v52, 0.0 }
 0x102   :  { %v357_v63 = vmax.f32 %v341_v55, 0.0  ;;  %v365_v0 = vmax.f32 %v349_v56, 0.0 }
 0x103   :  { %v355_v3 = vmax.f32 %v339_v59, 0.0  ;;  %v363_v4 = vmax.f32 %v347_v60, 0.0 }
 0x104   :  { %v517_v5 = vpack.c.bf16 %v357_v63, %v356_v61  ;;  %v537_v6 = vpack.c.bf16 %v365_v0, %v364_v62 }
 0x105   :  { %v512_v7 = vpack.c.bf16 %v355_v3, %v354_v1  ;;  %v532_v8 = vpack.c.bf16 %v363_v4, %v362_v2 }
 0x106   :  { %541 = vst [vmem:[%s724_s3 + $0x18] sm:$0xff] %v517_v5   ;;  %545 = vst [vmem:[%s724_s3 + $0x38] sm:$0xff] %v537_v6  }
 0x107   :  { %540 = vst [vmem:[%s724_s3 + $0x10] sm:$0xff] %v512_v7   ;;  %544 = vst [vmem:[%s724_s3 + $0x30] sm:$0xff] %v532_v8  }

// kernel: _forward_impl.3
= control target key start
LH: loop header
LB: loop body
LE: loop exit
PB: predicated region body
PF: predicated region fallthrough
CT: control target
= control target key end

     0   :  { %s1235_s1 = inlined_call_operand.vmem [shape: bf16[128,128], index: 1, kind: input, shape index: {}]   ;;  %s1236_s0 = inlined_call_operand.vmem [shape: bf16[128,128], index: 0, kind: input, shape index: {}]   ;;  %s1237_s2 = inlined_call_operand.vmem [shape: bf16[128,128], index: 2, kind: input, shape index: {}]   ;;  %s1238_s4 = inlined_call_operand.vmem [shape: bf16[128,128], index: 4, kind: input, shape index: {}]   ;;  %s1239_s3 = inlined_call_operand.vmem [shape: f32[1,128], index: 3, kind: input, shape index: {}]   ;;  %s1240_s5 = inlined_call_operand.vmem [shape: bf16[128,128], index: 5, kind: output, shape index: {}]  }
   0x1   :  { %v1050_v0 = vld [vmem:[%s1235_s1] sm:$0xff]   ;;  %v1051_v1 = vld [vmem:[%s1235_s1 + $0x8] sm:$0xff]   ;;  %v1052_v2 = vld [vmem:[%s1235_s1 + $0x10] sm:$0xff]  }
   0x2   :  { %938 = vmatprep.subr.bf16.mxu0 %v1050_v0  ;;  %v1053_v3 = vld [vmem:[%s1235_s1 + $0x18] sm:$0xff]   ;;  %v1058_v4 = vld [vmem:[%s1236_s0] sm:$0xff]   ;;  %v1055_v6 = vld [vmem:[%s1235_s1 + $0x28] sm:$0xff]  }
   0x3   :  { %939 = vmatpush3.bf16.msra.mxu0 %v1050_v0  ;;  %954 = vmatprep.mubr.bf16.mxu0 %v1058_v4  ;;  %v1054_v5 = vld [vmem:[%s1235_s1 + $0x20] sm:$0xff]   ;;  %v1067_v8 = vld [vmem:[%s1237_s2 + $0x8] sm:$0xff]   ;;  %v1056_v9 = vld [vmem:[%s1235_s1 + $0x30] sm:$0xff]  }
   0x4   :  { %940 = vmatprep.subr.bf16.mxu0 %v1051_v1  ;;  %v1066_v7 = vld [vmem:[%s1237_s2] sm:$0xff]   ;;  %v1068_v10 = vld [vmem:[%s1237_s2 + $0x10] sm:$0xff]   ;;  %v1057_v11 = vld [vmem:[%s1235_s1 + $0x38] sm:$0xff]  }
   0x5   :  { %970 = vmatprep.subr.bf16.mxu1 %v1066_v7  ;;  %v1069_v12 = vld [vmem:[%s1237_s2 + $0x18] sm:$0xff]   ;;  %v1070_v13 = vld [vmem:[%s1237_s2 + $0x20] sm:$0xff]   ;;  %v1059_v14 = vld [vmem:[%s1236_s0 + $0x8] sm:$0xff]  }
   0x6   :  { %971 = vmatpush3.bf16.msra.mxu1 %v1066_v7  ;;  %v1060_v15 = vld [vmem:[%s1236_s0 + $0x10] sm:$0xff]   ;;  %v1071_v16 = vld [vmem:[%s1237_s2 + $0x28] sm:$0xff]   ;;  %v1061_v18 = vld [vmem:[%s1236_s0 + $0x18] sm:$0xff]  }
   0x7   :  { %941 = vmatpush3.bf16.msra.mxu0 %v1051_v1  ;;  %972 = vmatprep.subr.bf16.mxu1 %v1067_v8  ;;  %v1072_v17 = vld [vmem:[%s1237_s2 + $0x30] sm:$0xff]   ;;  %v1062_v19 = vld [vmem:[%s1236_s0 + $0x20] sm:$0xff]   ;;  %v1063_v20 = vld [vmem:[%s1236_s0 + $0x28] sm:$0xff]  }
   0x8   :  { %942 = vmatprep.subr.bf16.mxu0 %v1052_v2  ;;  %v1064_v21 = vld [vmem:[%s1236_s0 + $0x30] sm:$0xff]   ;;  %v1065_v22 = vld [vmem:[%s1236_s0 + $0x38] sm:$0xff]   ;;  %v1074_v24 = vld [vmem:[%s1238_s4] sm:$0xff]  }
   0x9   :  { %v1073_v23 = vld [vmem:[%s1237_s2 + $0x38] sm:$0xff]   ;;  %v1075_v25 = vld [vmem:[%s1238_s4 + $0x8] sm:$0xff]   ;;  %v1076_v26 = vld [vmem:[%s1238_s4 + $0x10] sm:$0xff]  }
   0xa   :  { %973 = vmatpush3.bf16.msra.mxu1 %v1067_v8  ;;  %v1077_v27 = vld [vmem:[%s1238_s4 + $0x18] sm:$0xff]   ;;  %v1078_v28 = vld [vmem:[%s1238_s4 + $0x20] sm:$0xff]   ;;  %v1079_v29 = vld [vmem:[%s1238_s4 + $0x28] sm:$0xff]  }
   0xb   :  { %943 = vmatpush3.bf16.msra.mxu0 %v1052_v2  ;;  %974 = vmatprep.subr.bf16.mxu1 %v1068_v10  ;;  %v1080_v54 = vld [vmem:[%s1238_s4 + $0x30] sm:$0xff]   ;;  %v1081_v55 = vld [vmem:[%s1238_s4 + $0x38] sm:$0xff]   ;;  %v794_v56 = vld [vmem:[%s1239_s3] ss:$0 sm:$0xff] }
   0xc   :  { %944 = vmatprep.subr.bf16.mxu0 %v1053_v3 }
   0xe   :  { %975 = vmatpush3.bf16.msra.mxu1 %v1068_v10 }
   0xf   :  { %945 = vmatpush3.bf16.msra.mxu0 %v1053_v3  ;;  %976 = vmatprep.subr.bf16.mxu1 %v1069_v12 }
  0x10   :  { %946 = vmatprep.subr.bf16.mxu0 %v1054_v5 }
  0x12   :  { %977 = vmatpush3.bf16.msra.mxu1 %v1069_v12 }
  0x13   :  { %947 = vmatpush3.bf16.msra.mxu0 %v1054_v5  ;;  %978 = vmatprep.subr.bf16.mxu1 %v1070_v13 }
  0x14   :  { %948 = vmatprep.subr.bf16.mxu0 %v1055_v6 }
  0x16   :  { %979 = vmatpush3.bf16.msra.mxu1 %v1070_v13 }
  0x17   :  { %949 = vmatpush3.bf16.msra.mxu0 %v1055_v6  ;;  %980 = vmatprep.subr.bf16.mxu1 %v1071_v16 }
  0x18   :  { %950 = vmatprep.subr.bf16.mxu0 %v1056_v9 }
  0x1a   :  { %981 = vmatpush3.bf16.msra.mxu1 %v1071_v16 }
  0x1b   :  { %951 = vmatpush3.bf16.msra.mxu0 %v1056_v9  ;;  %982 = vmatprep.subr.bf16.mxu1 %v1072_v17 }
  0x1c   :  { %952 = vmatprep.subr.bf16.mxu0 %v1057_v11 }
  0x1e   :  { %983 = vmatpush3.bf16.msra.mxu1 %v1072_v17 }
  0x1f   :  { %953 = vmatpush3.bf16.msra.mxu0 %v1057_v11  ;;  %984 = vmatprep.subr.bf16.mxu1 %v1073_v23 }
  0x20   :  { %1002 = vmatprep.subr.bf16.mxu0 %v1074_v24 }
  0x22   :  { %955 = vmatmul.mubr.bf16.vlgmr.msra.gmra.mrb[0].mxu0 %v1059_v14  ;;  %985 = vmatpush3.bf16.msra.mxu1 %v1073_v23 }
  0x23   :  { %958 = vmatprep.mubr.bf16.mxu0 %v1060_v15  ;;  %1034 = vmatprep.subr.bf16.mxu1 %v1074_v24 }
  0x24   :  { %1003 = vmatpush3.bf16.msra.mxu0 %v1074_v24 }
  0x25   :  { %1004 = vmatprep.subr.bf16.mxu0 %v1075_v25 }
  0x28   :  { %1005 = vmatpush3.bf16.msra.mxu0 %v1075_v25 }
  0x29   :  { %1006 = vmatprep.subr.bf16.mxu0 %v1076_v26 }
  0x2a   :  { %959 = vmatmul.mubr.bf16.gmra.mrb[4].mxu0 %v1061_v18 }
  0x2b   :  { %962 = vmatprep.mubr.bf16.mxu0 %v1062_v19 }
  0x2c   :  { %1007 = vmatpush3.bf16.msra.mxu0 %v1076_v26 }
  0x2d   :  { %1008 = vmatprep.subr.bf16.mxu0 %v1077_v27 }
  0x30   :  { %1009 = vmatpush3.bf16.msra.mxu0 %v1077_v27 }
  0x31   :  { %1010 = vmatprep.subr.bf16.mxu0 %v1078_v28 }
  0x32   :  { %963 = vmatmul.mubr.bf16.gmra.mrb[8].mxu0 %v1063_v20 }
  0x33   :  { %966 = vmatprep.mubr.bf16.mxu0 %v1064_v21 }
  0x34   :  { %1011 = vmatpush3.bf16.msra.mxu0 %v1078_v28 }
  0x35   :  { %1012 = vmatprep.subr.bf16.mxu0 %v1079_v29 }
  0x38   :  { %1013 = vmatpush3.bf16.msra.mxu0 %v1079_v29 }
  0x39   :  { %1014 = vmatprep.subr.bf16.mxu0 %v1080_v54 }
  0x3a   :  { %967 = vmatmul.mubr.bf16.gmra.mrb[12].mxu0 %v1065_v22 }
  0x3c   :  { %1015 = vmatpush3.bf16.msra.mxu0 %v1080_v54 }
  0x3d   :  { %1016 = vmatprep.subr.bf16.mxu0 %v1081_v55 }
  0x40   :  { %1017 = vmatpush3.bf16.msra.mxu0 %v1081_v55 }
  0xf5   :  { %v956_v30 = vpop.f32.mrb[0].mxu0 }
  0xf6   :  { %v219_v31 = vpop.f32.mrb[1].mxu0 }
  0xf7   :  { %v957_v32 = vpop.f32.mrb[2].mxu0 }
  0xf8   :  { %v334_v33 = vpack.c.bf16 %v957_v32, %v956_v30  ;;  %v222_v34 = vpop.f32.mrb[3].mxu0 }
  0xf9   :  { %v333_v35 = vpack.c.bf16 %v222_v34, %v219_v31 }
  0xfb   :  { %986 = vmatprep.mubr.bf16.mxu1 %v333_v35 }
  0xfc   :  { %987 = vmatmul.mubr.bf16.vlgmr.msra.gmra.mrb[0].mxu1 %v334_v33 }
  0xfd   :  { %v960_v36 = vpop.f32.mrb[4].mxu0  ;;  %1042 = vmatpush3.bf16.msra.mxu1 %v1074_v24 }
  0xfe   :  { %v235_v37 = vpop.f32.mrb[5].mxu0  ;;  %1035 = vmatprep.subr.bf16.mxu1 %v1075_v25 }
  0xff   :  { %v961_v38 = vpop.f32.mrb[6].mxu0 }
 0x100   :  { %v336_v39 = vpack.c.bf16 %v961_v38, %v960_v36  ;;  %v238_v40 = vpop.f32.mrb[7].mxu0 }
 0x101   :  { %v335_v41 = vpack.c.bf16 %v238_v40, %v235_v37  ;;  %1043 = vmatpush3.bf16.msra.mxu1 %v1075_v25 }
 0x102   :  { %1036 = vmatprep.subr.bf16.mxu1 %v1076_v26 }
 0x103   :  { %990 = vmatprep.mubr.bf16.mxu1 %v335_v41 }
 0x104   :  { %991 = vmatmul.mubr.bf16.gmra.mrb[4].mxu1 %v336_v39 }
 0x105   :  { %v964_v42 = vpop.f32.mrb[8].mxu0  ;;  %1044 = vmatpush3.bf16.msra.mxu1 %v1076_v26 }
 0x106   :  { %v251_v43 = vpop.f32.mrb[9].mxu0  ;;  %1037 = vmatprep.subr.bf16.mxu1 %v1077_v27 }
 0x107   :  { %v965_v44 = vpop.f32.mrb[10].mxu0 }
 0x108   :  { %v338_v45 = vpack.c.bf16 %v965_v44, %v964_v42  ;;  %v254_v46 = vpop.f32.mrb[11].mxu0 }
 0x109   :  { %v337_v47 = vpack.c.bf16 %v254_v46, %v251_v43  ;;  %1045 = vmatpush3.bf16.msra.mxu1 %v1077_v27 }
 0x10a   :  { %1038 = vmatprep.subr.bf16.mxu1 %v1078_v28 }
 0x10b   :  { %994 = vmatprep.mubr.bf16.mxu1 %v337_v47 }
 0x10c   :  { %995 = vmatmul.mubr.bf16.gmra.mrb[8].mxu1 %v338_v45 }
 0x10d   :  { %v968_v48 = vpop.f32.mrb[12].mxu0  ;;  %1046 = vmatpush3.bf16.msra.mxu1 %v1078_v28 }
 0x10e   :  { %v267_v49 = vpop.f32.mrb[13].mxu0  ;;  %1039 = vmatprep.subr.bf16.mxu1 %v1079_v29 }
 0x10f   :  { %v969_v50 = vpop.f32.mrb[14].mxu0 }
 0x110   :  { %v340_v51 = vpack.c.bf16 %v969_v50, %v968_v48  ;;  %v270_v52 = vpop.f32.mrb[15].mxu0 }
 0x111   :  { %v339_v53 = vpack.c.bf16 %v270_v52, %v267_v49  ;;  %1047 = vmatpush3.bf16.msra.mxu1 %v1079_v29 }
 0x112   :  { %1040 = vmatprep.subr.bf16.mxu1 %v1080_v54 }
 0x113   :  { %998 = vmatprep.mubr.bf16.mxu1 %v339_v53 }
 0x114   :  { %999 = vmatmul.mubr.bf16.gmra.mrb[12].mxu1 %v340_v51 }
 0x115   :  { %1048 = vmatpush3.bf16.msra.mxu1 %v1080_v54 }
 0x116   :  { %1041 = vmatprep.subr.bf16.mxu1 %v1081_v55 }
 0x119   :  { %1049 = vmatpush3.bf16.msra.mxu1 %v1081_v55 }
 0x1cf   :  { %v988_v57 = vpop.f32.mrb[0].mxu1 }
 0x1d0   :  { %v455_v58 = vadd.f32 %v988_v57, %v794_v56  ;;  %v446_v59 = vpop.f32.mrb[1].mxu1 }
 0x1d1   :  { %v447_v60 = vadd.f32 %v794_v56, %v446_v59  ;;  %v989_v61 = vpop.f32.mrb[2].mxu1 }
 0x1d2   :  { %v458_v62 = vadd.f32 %v989_v61, %v794_v56  ;;  %v449_v63 = vpop.f32.mrb[3].mxu1  ;;  %v511_v1 = vmax.f32 %v455_v58, 0.0 }
 0x1d3   :  { %v450_v0 = vadd.f32 %v794_v56, %v449_v63  ;;  %v509_v3 = vmax.f32 %v447_v60, 0.0 }
 0x1d4   :  { %v512_v2 = vmax.f32 %v458_v62, 0.0 }
 0x1d5   :  { %v510_v4 = vmax.f32 %v450_v0, 0.0 }
 0x1d6   :  { %v526_v5 = vpack.c.bf16 %v512_v2, %v511_v1 }
 0x1d7   :  { %v525_v6 = vpack.c.bf16 %v510_v4, %v509_v3  ;;  %v992_v7 = vpop.f32.mrb[4].mxu1 }
 0x1d8   :  { %v471_v8 = vadd.f32 %v992_v7, %v794_v56  ;;  %v462_v9 = vpop.f32.mrb[5].mxu1 }
 0x1d9   :  { %v463_v10 = vadd.f32 %v794_v56, %v462_v9  ;;  %v993_v11 = vpop.f32.mrb[6].mxu1  ;;  %1018 = vmatprep.mubr.bf16.mxu0 %v525_v6 }
 0x1da   :  { %v474_v12 = vadd.f32 %v993_v11, %v794_v56  ;;  %v465_v13 = vpop.f32.mrb[7].mxu1  ;;  %1019 = vmatmul.mubr.bf16.vlgmr.msra.gmra.mrb[16].mxu0 %v526_v5  ;;  %v515_v15 = vmax.f32 %v471_v8, 0.0 }
 0x1db   :  { %v466_v14 = vadd.f32 %v794_v56, %v465_v13  ;;  %v513_v17 = vmax.f32 %v463_v10, 0.0 }
 0x1dc   :  { %v516_v16 = vmax.f32 %v474_v12, 0.0 }
 0x1dd   :  { %v514_v18 = vmax.f32 %v466_v14, 0.0 }
 0x1de   :  { %v528_v19 = vpack.c.bf16 %v516_v16, %v515_v15 }
 0x1df   :  { %v527_v20 = vpack.c.bf16 %v514_v18, %v513_v17  ;;  %v996_v21 = vpop.f32.mrb[8].mxu1 }
 0x1e0   :  { %v487_v22 = vadd.f32 %v996_v21, %v794_v56  ;;  %v478_v23 = vpop.f32.mrb[9].mxu1 }
 0x1e1   :  { %v479_v24 = vadd.f32 %v794_v56, %v478_v23  ;;  %v997_v25 = vpop.f32.mrb[10].mxu1  ;;  %1022 = vmatprep.mubr.bf16.mxu0 %v527_v20 }
 0x1e2   :  { %v490_v26 = vadd.f32 %v997_v25, %v794_v56  ;;  %v481_v27 = vpop.f32.mrb[11].mxu1  ;;  %1023 = vmatmul.mubr.bf16.gmra.mrb[20].mxu0 %v528_v19  ;;  %v519_v29 = vmax.f32 %v487_v22, 0.0 }
 0x1e3   :  { %v482_v28 = vadd.f32 %v794_v56, %v481_v27  ;;  %v517_v31 = vmax.f32 %v479_v24, 0.0 }
 0x1e4   :  { %v520_v30 = vmax.f32 %v490_v26, 0.0 }
 0x1e5   :  { %v518_v32 = vmax.f32 %v482_v28, 0.0 }
 0x1e6   :  { %v530_v33 = vpack.c.bf16 %v520_v30, %v519_v29 }
 0x1e7   :  { %v529_v34 = vpack.c.bf16 %v518_v32, %v517_v31  ;;  %v1000_v35 = vpop.f32.mrb[12].mxu1 }
 0x1e8   :  { %v503_v36 = vadd.f32 %v1000_v35, %v794_v56  ;;  %v494_v37 = vpop.f32.mrb[13].mxu1 }
 0x1e9   :  { %v495_v38 = vadd.f32 %v794_v56, %v494_v37  ;;  %v1001_v39 = vpop.f32.mrb[14].mxu1  ;;  %1026 = vmatprep.mubr.bf16.mxu1 %v529_v34 }
 0x1ea   :  { %v506_v40 = vadd.f32 %v1001_v39, %v794_v56  ;;  %v497_v41 = vpop.f32.mrb[15].mxu1  ;;  %1027 = vmatmul.mubr.bf16.vlgmr.msra.gmra.mrb[16].mxu1 %v530_v33  ;;  %v523_v43 = vmax.f32 %v503_v36, 0.0 }
 0x1eb   :  { %v498_v42 = vadd.f32 %v794_v56, %v497_v41  ;;  %v521_v45 = vmax.f32 %v495_v38, 0.0 }
 0x1ec   :  { %v524_v44 = vmax.f32 %v506_v40, 0.0 }
 0x1ed   :  { %v522_v46 = vmax.f32 %v498_v42, 0.0 }
 0x1ee   :  { %v532_v47 = vpack.c.bf16 %v524_v44, %v523_v43 }
 0x1ef   :  { %v531_v48 = vpack.c.bf16 %v522_v46, %v521_v45 }
 0x1f1   :  { %1030 = vmatprep.mubr.bf16.mxu1 %v531_v48 }
 0x1f2   :  { %1031 = vmatmul.mubr.bf16.gmra.mrb[20].mxu1 %v532_v47 }
 0x2ad   :  { %v1020_v49 = vpop.f32.mrb[16].mxu0 }
 0x2ae   :  { %v631_v50 = vpop.f32.mrb[17].mxu0 }
 0x2af   :  { %v1021_v51 = vpop.f32.mrb[18].mxu0 }
 0x2b0   :  { %v851_v52 = vpack.c.bf16 %v1021_v51, %v1020_v49  ;;  %v634_v53 = vpop.f32.mrb[19].mxu0 }
 0x2b1   :  { %v846_v54 = vpack.c.bf16 %v634_v53, %v631_v50 }
 0x2b2   :  { %883 = vst [vmem:[%s1240_s5 + $0x8] sm:$0xff] %v851_v52  }
 0x2b3   :  { %847 = vst [vmem:[%s1240_s5] sm:$0xff] %v846_v54  }
 0x2b5   :  { %v1024_v55 = vpop.f32.mrb[20].mxu0 }
 0x2b6   :  { %v647_v56 = vpop.f32.mrb[21].mxu0 }
 0x2b7   :  { %v1025_v57 = vpop.f32.mrb[22].mxu0 }
 0x2b8   :  { %v861_v58 = vpack.c.bf16 %v1025_v57, %v1024_v55  ;;  %v650_v59 = vpop.f32.mrb[23].mxu0 }
 0x2b9   :  { %v856_v60 = vpack.c.bf16 %v650_v59, %v647_v56 }
 0x2ba   :  { %885 = vst [vmem:[%s1240_s5 + $0x18] sm:$0xff] %v861_v58  }
 0x2bb   :  { %884 = vst [vmem:[%s1240_s5 + $0x10] sm:$0xff] %v856_v60  }
 0x2bd   :  { %v1028_v61 = vpop.f32.mrb[16].mxu1 }
 0x2be   :  { %v663_v62 = vpop.f32.mrb[17].mxu1 }
 0x2bf   :  { %v1029_v63 = vpop.f32.mrb[18].mxu1 }
 0x2c0   :  { %v871_v0 = vpack.c.bf16 %v1029_v63, %v1028_v61  ;;  %v666_v1 = vpop.f32.mrb[19].mxu1 }
 0x2c1   :  { %v866_v2 = vpack.c.bf16 %v666_v1, %v663_v62 }
 0x2c2   :  { %887 = vst [vmem:[%s1240_s5 + $0x28] sm:$0xff] %v871_v0  }
 0x2c3   :  { %886 = vst [vmem:[%s1240_s5 + $0x20] sm:$0xff] %v866_v2  }
 0x2c5   :  { %v1032_v3 = vpop.f32.mrb[20].mxu1 }
 0x2c6   :  { %v679_v4 = vpop.f32.mrb[21].mxu1 }
 0x2c7   :  { %v1033_v5 = vpop.f32.mrb[22].mxu1 }
 0x2c8   :  { %v881_v6 = vpack.c.bf16 %v1033_v5, %v1032_v3  ;;  %v682_v7 = vpop.f32.mrb[23].mxu1 }
 0x2c9   :  { %v876_v8 = vpack.c.bf16 %v682_v7, %v679_v4 }
 0x2ca   :  { %889 = vst [vmem:[%s1240_s5 + $0x38] sm:$0xff] %v881_v6  }
 0x2cb   :  { %888 = vst [vmem:[%s1240_s5 + $0x30] sm:$0xff] %v876_v8  }

</bundles_post_ra>
